<compile_context>
chip_gen: v5e
topology: v5e:2x2
jax: 0.10.0
libtpu: 0.0.40
codegen_flags: <defaults>
</compile_context>

<pallas_src>
import math

import jax
import jax.numpy as jnp
from jax import lax
from jax.experimental import pallas as pl
from jax.experimental.pallas import tpu as pltpu


def _round_up(x, m):
    return (x + m - 1) // m * m


def _pick_tile(dim, align, cap):
    """Largest aligned tile <= cap that minimizes padding of `dim`."""
    d = _round_up(dim, align)
    cap = max(align, cap - cap % align)
    if d <= cap:
        return d
    nblocks = -(-d // cap)                       # ceil
    return _round_up(-(-d // nblocks), align)


# ----------------------------------------------------------------------------
# Kernels
# ----------------------------------------------------------------------------
def basic_fc_kernel(x_ref, w_ref, b_ref, o_ref):
    # x_ref: (tm, tk) bf16, w_ref: (tn, tk) bf16 (native Linear layout),
    # b_ref: (1, tn) f32, o_ref: (tm, tn) f32 (k-resident accumulator).
    k = pl.program_id(2)

    @pl.when(k == 0)
    def _():
        o_ref[...] = jnp.zeros_like(o_ref)

    # Contract the shared Cin axis: (tm, tk) x (tn, tk) -> (tm, tn).
    o_ref[...] += lax.dot_general(
        x_ref[...], w_ref[...],
        dimension_numbers=(((1,), (1,)), ((), ())),
        preferred_element_type=jnp.float32,
    )

    @pl.when(k == pl.num_programs(2) - 1)
    def _():
        # Epilogue once per output tile: bias broadcast + ReLU, in place.
        o_ref[...] = jnp.maximum(o_ref[...] + b_ref[...], 0.0)


def basic_fc_small_kernel(x_ref, w_ref, b_ref, o_ref):
    # Single-block fast path: whole (padded) problem resident in VMEM.
    acc = lax.dot_general(
        x_ref[...], w_ref[...],
        dimension_numbers=(((1,), (1,)), ((), ())),
        preferred_element_type=jnp.float32,
    )
    o_ref[...] = jnp.maximum(acc + b_ref[...], 0.0)


# ----------------------------------------------------------------------------
# Wrapper
# ----------------------------------------------------------------------------
def basic_fc(x, w, b, *, tm=None, tn=None, tk=None):
    """BasicFC forward: relu(x @ w.T + b).

    x: (B, Cin), w: (Cout, Cin) (PyTorch nn.Linear layout), b: (Cout,).
    Returns (B, Cout) in x.dtype.
    """
    B, Cin = x.shape
    Cout, _ = w.shape
    out_dtype = x.dtype

    # ---- Tile selection (padding-minimizing, VMEM-friendly caps). ----------
    if tm is None:
        tm = _pick_tile(B, 16, 512)       # bf16 LHS: sublane multiple of 16
    if tn is None:
        tn = _pick_tile(Cout, 128, 512)   # lane-dense output (>=128 multiple)
    if tk is None:
        tk = _pick_tile(Cin, 128, 1024)

    Mp = _round_up(B, tm)
    Np = _round_up(Cout, tn)
    Kp = _round_up(Cin, tk)

    # ---- bf16 operands (cast BEFORE padding); pad only when needed. --------
    x_bf = x.astype(jnp.bfloat16)
    w_bf = w.astype(jnp.bfloat16)                       # native (Cout, Cin)
    b_f32 = b.astype(jnp.float32).reshape(1, Cout)

    if (Mp, Kp) != (B, Cin):
        x_bf = jnp.zeros((Mp, Kp), jnp.bfloat16).at[:B, :Cin].set(x_bf)
    if (Np, Kp) != (Cout, Cin):
        w_bf = jnp.zeros((Np, Kp), jnp.bfloat16).at[:Cout, :Cin].set(w_bf)
    if Np != Cout:
        b_f32 = jnp.zeros((1, Np), jnp.float32).at[:, :Cout].set(b_f32)

    grid = (Mp // tm, Np // tn, Kp // tk)

    # ---- VMEM budget clamped to the real chip capacity. --------------------
    try:
        info = pltpu.get_tpu_info()
        vmem_cap = int(getattr(info, "vmem_capacity_bytes", 64 << 20))
    except Exception:
        vmem_cap = 64 << 20                              # conservative (v7x)
    vmem_need = (
        2 * (tm * tk * 2 + tn * tk * 2 + tn * 4)         # 2x-buffered x, w, b
        + 2 * tm * tn * 4                                # 2x-buffered f32 out
    )
    vmem_limit = min(max(2 * vmem_need + (4 << 20), 16 << 20),
                     (vmem_cap * 3) // 4)

    cost = pl.CostEstimate(
        flops=2 * B * Cin * Cout,
        transcendentals=0,
        bytes_accessed=(Mp * Kp * 2 + Np * Kp * 2 + Np * 4 + Mp * Np * 4),
    )

    if grid == (1, 1, 1):
        # ---- Single-block fast path: no grid, no accumulator phases. -------
        out_padded = pl.pallas_call(
            basic_fc_small_kernel,
            out_shape=jax.ShapeDtypeStruct((Mp, Np), jnp.float32),
            in_specs=[
                pl.BlockSpec((Mp, Kp), lambda: (0, 0)),
                pl.BlockSpec((Np, Kp), lambda: (0, 0)),
                pl.BlockSpec((1, Np), lambda: (0, 0)),
            ],
            out_specs=pl.BlockSpec((Mp, Np), lambda: (0, 0)),
            compiler_params=pltpu.CompilerParams(
                vmem_limit_bytes=vmem_limit,
            ),
            cost_estimate=cost,
        )(x_bf, w_bf, b_f32)
    else:
        # ---- Tiled path: M, N parallel (megacore), K last/arbitrary. -------
        out_padded = pl.pallas_call(
            basic_fc_kernel,
            out_shape=jax.ShapeDtypeStruct((Mp, Np), jnp.float32),
            grid_spec=pltpu.PrefetchScalarGridSpec(
                num_scalar_prefetch=0,
                grid=grid,
                in_specs=[
                    pl.BlockSpec((tm, tk), lambda i, j, k: (i, k)),
                    pl.BlockSpec((tn, tk), lambda i, j, k: (j, k)),
                    pl.BlockSpec((1, tn), lambda i, j, k: (0, j)),
                ],
                out_specs=pl.BlockSpec((tm, tn), lambda i, j, k: (i, j)),
            ),
            compiler_params=pltpu.CompilerParams(
                dimension_semantics=("parallel", "parallel", "arbitrary"),
                vmem_limit_bytes=vmem_limit,
            ),
            cost_estimate=cost,
        )(x_bf, w_bf, b_f32)

    return out_padded[:B, :Cout].astype(out_dtype)


# ----------------------------------------------------------------------------
# Test
# ----------------------------------------------------------------------------
def _check(x, w, b, atol_strict, atol_loose):
    out = jax.block_until_ready(basic_fc(x, w, b))
    assert out.shape == (x.shape[0], w.shape[0])

    # Strict reference: same bf16-rounded operands, f32 accumulation.
    x_q = x.astype(jnp.bfloat16).astype(jnp.float32)
    w_q = w.astype(jnp.bfloat16).astype(jnp.float32)
    ref_bf16 = jnp.maximum(x_q @ w_q.T + b, 0.0)
    assert jnp.allclose(out, ref_bf16, atol=atol_strict, rtol=atol_strict)

    # Loose reference: full f32 math (bounds bf16 quantization error).
    ref_f32 = jnp.maximum(x @ w.T + b, 0.0)
    assert jnp.allclose(out, ref_f32, atol=atol_loose, rtol=atol_loose)


if __name__ == "__main__":
    key = jax.random.PRNGKey(0)
    k_x, k_w, k_b, k_x2, k_w2, k_b2 = jax.random.split(key, 6)

    # --- Primary (toy) case: exercises the single-block fast path. ----------
    batch, in_channels, out_channels = 8, 32, 64
    bound = 1.0 / math.sqrt(in_channels)
    w = jax.random.uniform(k_w, (out_channels, in_channels),
                           minval=-bound, maxval=bound, dtype=jnp.float32)
    b = jax.random.uniform(k_b, (out_channels,),
                           minval=-bound, maxval=bound, dtype=jnp.float32)
    x = jax.random.normal(k_x, (batch, in_channels), dtype=jnp.float32)
    _check(x, w, b, atol_strict=1e-4, atol_loose=5e-2)

    # --- Secondary case: exercises the tiled grid path (N and K > 1 block). -
    batch2, in2, out2 = 16, 1152, 640
    bound2 = 1.0 / math.sqrt(in2)
    w2 = jax.random.uniform(k_w2, (out2, in2),
                            minval=-bound2, maxval=bound2, dtype=jnp.float32)
    b2 = jax.random.uniform(k_b2, (out2,),
                            minval=-bound2, maxval=bound2, dtype=jnp.float32)
    x2 = jax.random.normal(k_x2, (batch2, in2), dtype=jnp.float32)
    _check(x2, w2, b2, atol_strict=2e-3, atol_loose=5e-2)

    print("KERNEL_OK")
</pallas_src>

<mosaic_0001>
module attributes {stable_mosaic.version = 11 : i64} {
  func.func @basic_fc_small_kernel(%arg0: memref<16x128xbf16, #tpu.memory_space<vmem>>, %arg1: memref<128x128xbf16, #tpu.memory_space<vmem>>, %arg2: memref<1x128xf32, #tpu.memory_space<vmem>>, %arg3: memref<16x128xf32, #tpu.memory_space<vmem>>) attributes {dimension_semantics = [], scalar_prefetch = 0 : i64, scratch_operands = 0 : i64, tpu.core_type = #tpu.core_type<tc>} {
    %c0 = arith.constant 0 : index
    %c0_0 = arith.constant 0 : index
    %0 = vector.load %arg0[%c0, %c0_0] : memref<16x128xbf16, #tpu.memory_space<vmem>>, vector<16x128xbf16>
    %c0_1 = arith.constant 0 : index
    %c0_2 = arith.constant 0 : index
    %1 = vector.load %arg1[%c0_1, %c0_2] : memref<128x128xbf16, #tpu.memory_space<vmem>>, vector<128x128xbf16>
    %cst = arith.constant dense<0.000000e+00> : vector<16x128xf32>
    %2 = tpu.matmul %0, %1, %cst {dimension_numbers = #tpu.dot_dimension_numbers<[1], [1], [0], [0], [0, 0, 1, 0], [], []>} : vector<16x128xbf16>, vector<128x128xbf16>, vector<16x128xf32> -> vector<16x128xf32>
    %c0_3 = arith.constant 0 : index
    %c0_4 = arith.constant 0 : index
    %3 = vector.load %arg2[%c0_3, %c0_4] : memref<1x128xf32, #tpu.memory_space<vmem>>, vector<1x128xf32>
    %4 = vector.broadcast %3 : vector<1x128xf32> to vector<16x128xf32>
    %5 = arith.addf %2, %4 : vector<16x128xf32>
    %cst_5 = arith.constant 0.000000e+00 : f32
    %6 = vector.broadcast %cst_5 : f32 to vector<16x128xf32>
    %7 = arith.maximumf %5, %6 : vector<16x128xf32>
    %c0_6 = arith.constant 0 : index
    %c0_7 = arith.constant 0 : index
    %8 = vector.load %arg3[%c0_6, %c0_7] : memref<16x128xf32, #tpu.memory_space<vmem>>, vector<16x128xf32>
    tpu.vector_store %arg3[%c0_6, %c0_7], %7 {strides = array<i32>} : memref<16x128xf32, #tpu.memory_space<vmem>>, vector<16x128xf32>,
    return
  }
}

</mosaic_0001>

<bundles_post_ra>
// kernel: tpu_custom_call.1
= control target key start
LH: loop header
LB: loop body
LE: loop exit
PB: predicated region body
PF: predicated region fallthrough
CT: control target
= control target key end

     0   :  { %8 = vsyncpa [#allocation3], 0  ;;  %s331_s0 = inlined_call_operand.hbm [shape: bf16[16,128], index: 0, kind: input, shape index: {}]   ;;  %s332_s1 = inlined_call_operand.hbm [shape: bf16[128,128], index: 1, kind: input, shape index: {}]   ;;  %s333_s2 = inlined_call_operand.vmem [shape: f32[1,128], index: 2, kind: input, shape index: {}]   ;;  %s334_s3 = inlined_call_operand.hbm [shape: f32[16,128], index: 3, kind: output, shape index: {}]  }
   0x1   :  { %9 = vsyncpa [#allocation6], 0 }
   0x2   :  { %10 = vsyncpa [#allocation4], 0  ;;  %s15_s14 = sshll.u32 %s331_s0, 4  ;;  %s292_s15 = smov [#allocation2]   ;;  %s16_s14 = int_to_ptr.hbm [resolvable:$true] %s15_s14 }
   0x3   :  { %s17_s16 = sshll.u32 %s292_s15, 4  ;;  %s28_s19 = sshll.u32 %s332_s1, 4  ;;  %s18_s16 = int_to_ptr.vmem [resolvable:$true] %s17_s16  ;;  %s29_s19 = int_to_ptr.hbm [resolvable:$true] %s28_s19 }
   0x4   :  { %s293_s20 = smov 64   ;;  %s294_s21 = smov 4  }
   0x5   :  { %23 = dma.hbm_to_vmem [thread:$0]  %s16_s14, 128, %s18_s16, [#allocation3], %s293_s20, %s293_s20, %s294_s21  }
   0x6   :  { %s295_s22 = smov [#allocation5]  }
   0x7   :  { %s30_s23 = sshll.u32 %s295_s22, 4  ;;  %s31_s23 = int_to_ptr.vmem [resolvable:$true] %s30_s23 }
   0x8   :  { %36 = dma.hbm_to_vmem [thread:$0]  %s29_s19, 1024, %s31_s23, [#allocation6], %s293_s20, %s293_s20, %s294_s21  }
   0x9   :  { %286 = dma.done.wait [#allocation3], 128  }
   0xa   :  { %287 = vsyncadd [#allocation3], 4294967168 }
   0xb   :  { %288 = dma.done.wait [#allocation6], 1024  }
   0xc   :  { %289 = vsyncadd [#allocation6], 4294966272  ;;  %v205_v0 = vld [vmem:[#allocation5 + $0x38] sm:$0xff]  ;;  %v204_v1 = vld [vmem:[#allocation5 + $0x30] sm:$0xff]  ;;  %s296_s24 = smov [#allocation7]   ;;  %s147_s28 = sshll.u32 %s334_s3, 4  ;;  %s148_s28 = int_to_ptr.hbm [resolvable:$true] %s147_s28 }
   0xd   :  { %123 = vmatpush.bf16.xpose.msra.mxu0 %v205_v0  ;;  %v203_v2 = vld [vmem:[#allocation5 + $0x28] sm:$0xff]  ;;  %v202_v3 = vld [vmem:[#allocation5 + $0x20] sm:$0xff]  ;;  %v201_v4 = vld [vmem:[#allocation5 + $0x18] sm:$0xff]  ;;  %s145_s25 = sshll.u32 %s296_s24, 4  ;;  %s297_s29 = smov 128   ;;  %s146_s25 = int_to_ptr.vmem [resolvable:$true] %s145_s25 }
   0xe   :  { %v200_v5 = vld [vmem:[#allocation5 + $0x10] sm:$0xff]  ;;  %v199_v6 = vld [vmem:[#allocation5 + $0x8] sm:$0xff]  ;;  %v198_v7 = vld [vmem:[#allocation5] sm:$0xff]  ;;  %s298_s30 = smov 8  }
   0xf   :  { %v197_v8 = vld [vmem:[#allocation2] sm:$0xff] }
  0x10   :  { %v213_v9 = vld [vmem:[%s333_s2] ss:$0 sm:$0xff] }
  0x15   :  { %124 = vmatpush.bf16.xpose.msra.mxu0 %v204_v1 }
  0x1d   :  { %125 = vmatpush.bf16.xpose.msra.mxu0 %v203_v2 }
  0x25   :  { %126 = vmatpush.bf16.xpose.msra.mxu0 %v202_v3 }
  0x2d   :  { %127 = vmatpush.bf16.xpose.msra.mxu0 %v201_v4 }
  0x35   :  { %128 = vmatpush.bf16.xpose.msra.mxu0 %v200_v5 }
  0x3d   :  { %129 = vmatpush.bf16.xpose.msra.mxu0 %v199_v6 }
  0x45   :  { %130 = vmatpush.bf16.xpose.msra.mxu0 %v198_v7 }
  0x4c   :  { %131 = vmatmul.bf16.vlgmr.msra.gmra.mxu0 %v197_v8 }
  0xc9   :  { %v132_v10 = vpop.f32.mrf.mxu0 }
  0xca   :  { %v133_v11 = vadd.f32 %v213_v9, %v132_v10 }
  0xcc   :  { %v137_v12 = vmax.f32 %v133_v11, 0.0 }
  0xce   :  { %139 = vst [vmem:[#allocation7] sm:$0xff] %v137_v12 }
  0xd1   :  { %v134_v13 = vpop.f32.mrf.mxu0 }
  0xd2   :  { %v135_v14 = vadd.f32 %v213_v9, %v134_v13 }
  0xd4   :  { %v138_v15 = vmax.f32 %v135_v14, 0.0 }
  0xd6   :  { %140 = vst [vmem:[#allocation7 + $0x8] sm:$0xff] %v138_v15 }
  0xd7   :  { %153 = dma.vmem_to_hbm [thread:$0]  %s146_s25, 256, %s148_s28, [#allocation4], %s297_s29, %s297_s29, %s298_s30  }
  0xd8   :  { %290 = dma.done.wait [#allocation4], 256  }
  0xd9   :  { %291 = vsyncadd [#allocation4], 4294967040 }
  0xda   :  { %158 = vsyncpa [#allocation3], 1 }
  0xdb   :  { %159 = vsyncpa [#allocation6], 1 }
  0xdc   :  { %160 = vsyncpa [#allocation4], 1 }

</bundles_post_ra>
